<compile_context>
chip_gen: v7x
topology: tpu7x:2x2x1
jax: 0.10.0
libtpu: 0.0.40
codegen_flags: <defaults>
</compile_context>

<pallas_src>
import functools

import jax
import jax.numpy as jnp
from jax import lax
from jax.experimental import pallas as pl
from jax.experimental.pallas import tpu as pltpu


_COL_CHUNK = 512   # lanes per in-kernel column chunk (multiple of 128)
_LANE = 128
_SUBLANE = 8


def _supcon_partial_kernel(x_ref, out_ref, *, batch_size: int, tile_rows: int):
    """Per-row-tile partial of the SupCon loss.

    partial = (1/B)   * sum_{i in tile} logsumexp_j(x_ij)
            - (1/B^2) * sum_{i in tile, j} x_ij
    """
    tm = tile_rows
    n_cols = batch_size
    f32 = jnp.float32
    native = x_ref.dtype
    # MXU row-sum offload is exact for bf16 (products exact, f32 accumulation).
    mxu_rowsum = (native == jnp.bfloat16)

    # Static column-chunk boundaries: full 512-lane chunks + one tail chunk.
    starts = list(range(0, n_cols, _COL_CHUNK))

    ones_rhs = None
    if mxu_rowsum and n_cols >= _COL_CHUNK:
        # Resident all-ones RHS for the MXU row sum (hoisted out of the loop).
        ones_rhs = jnp.ones((_COL_CHUNK, _LANE), dtype=native)

    # ---- Pass 1: per-row max (native-dtype compares) and per-row sum. ----
    m = jnp.full((tm, 1), -jnp.inf, dtype=f32)
    s = jnp.zeros((tm, 1), dtype=f32)
    for c0 in starts:
        cs = min(_COL_CHUNK, n_cols - c0)
        chunk = x_ref[:, c0:c0 + cs]                       # native dtype view
        m = jnp.maximum(m, jnp.max(chunk, axis=1, keepdims=True).astype(f32))
        if mxu_rowsum and cs == _COL_CHUNK:
            # bf16 @ all-ones on the (otherwise idle) MXU; take one column.
            s = s + jnp.dot(chunk, ones_rhs, preferred_element_type=f32)[:, :1]
        else:
            s = s + jnp.sum(chunk.astype(f32), axis=1, keepdims=True)

    # ---- Pass 2: per-row sum of exp(x - m), one f32 chunk at a time. ----
    e = jnp.zeros((tm, 1), dtype=f32)
    for c0 in starts:
        cs = min(_COL_CHUNK, n_cols - c0)
        chunk = x_ref[:, c0:c0 + cs].astype(f32)
        e = e + jnp.sum(jnp.exp(chunk - m), axis=1, keepdims=True)

    # Stabilized row logsumexp (identical to log(sum(exp(x))), overflow-safe).
    lse = m + jnp.log(e)

    rem = batch_size % tile_rows
    if rem == 0:
        lse_sum = jnp.sum(lse)
        row_sum_total = jnp.sum(s)
    else:
        # Only the last grid step carries padded rows; pick its valid-prefix
        # sums with a scalar select so NaN/Inf garbage in the Pallas edge-block
        # padding can never leak into the result.
        is_last = pl.program_id(0) == pl.num_programs(0) - 1
        lse_sum = jnp.where(is_last, jnp.sum(lse[:rem]), jnp.sum(lse))
        row_sum_total = jnp.where(is_last, jnp.sum(s[:rem]), jnp.sum(s))

    inv_b = 1.0 / batch_size
    partial = inv_b * lse_sum - (inv_b * inv_b) * row_sum_total
    out_ref[...] = jnp.broadcast_to(partial, out_ref.shape)


def _choose_tile_rows(batch_size: int, itemsize: int) -> int:
    """Row-tile size: big enough to hide per-step overhead, VMEM-safe on v7x."""
    # Sublane packing: 8 rows for 32-bit, 16 for bf16, 32 for int8/fp8.
    align = max(_SUBLANE, 32 // max(itemsize, 1))
    if batch_size <= 2 * align:
        return batch_size                       # single full-array tile
    # ~8 MiB per input buffer in the native dtype: amortizes the ~0.35 us
    # grid-step overhead (near HBM roofline) while 2x double-buffered tiles
    # plus in-kernel chunk temps stay well inside even v7x's 64 MiB VMEM.
    target_bytes = 8 * 1024 * 1024
    tm = max(target_bytes // (batch_size * itemsize), align)
    tm = min(tm, 1024, batch_size)
    # Give the "parallel" grid axis at least 2 tiles (v7x has 2 TensorCores).
    tm = min(tm, max(pl.cdiv(batch_size, 2), align))
    return max(align, (tm // align) * align)


def _vmem_limit_bytes() -> int:
    """Generation-aware scoped-VMEM request (64 MiB v5e/v6e, 48 MiB v7x)."""
    cap = 64 * 1024 * 1024                      # conservative fallback
    try:
        cap = int(getattr(pltpu.get_tpu_info(), "vmem_capacity_bytes", cap))
    except Exception:
        pass
    return int(min(64 * 1024 * 1024, (3 * cap) // 4))


def supcon_loss(logits: jax.Array) -> jax.Array:
    """Pallas TPU implementation of SupConLoss.forward (temperature = 1.0)."""
    assert logits.ndim == 2 and logits.shape[0] == logits.shape[1], (
        "SupConLoss expects square (B, B) logits")
    batch_size = logits.shape[0]
    itemsize = jnp.dtype(logits.dtype).itemsize

    tm = _choose_tile_rows(batch_size, itemsize)
    num_tiles = pl.cdiv(batch_size, tm)

    kernel = functools.partial(_supcon_partial_kernel,
                               batch_size=batch_size, tile_rows=tm)

    partials = pl.pallas_call(
        kernel,
        out_shape=jax.ShapeDtypeStruct((num_tiles, _SUBLANE, _LANE), jnp.float32),
        grid_spec=pltpu.PrefetchScalarGridSpec(
            num_scalar_prefetch=0,
            grid=(num_tiles,),
            # Full-width row tiles in the input's *native* dtype (bf16 halves
            # HBM traffic); per-chunk casts to f32 happen inside the kernel.
            in_specs=[pl.BlockSpec((tm, batch_size), lambda i: (i, 0))],
            # Lane-dense per-tile partial: one (1, 8, 128) block per step.
            out_specs=pl.BlockSpec((1, _SUBLANE, _LANE), lambda i: (i, 0, 0)),
        ),
        compiler_params=pltpu.CompilerParams(
            # Independent row tiles -> parallel (shards across TCs on v7x).
            dimension_semantics=("parallel",),
            vmem_limit_bytes=_vmem_limit_bytes(),
        ),
        # Advisory hint so XLA schedules neighboring HLOs around this call.
        cost_estimate=pl.CostEstimate(
            flops=5 * batch_size * batch_size,
            transcendentals=batch_size * batch_size,
            bytes_accessed=(batch_size * batch_size * itemsize
                            + num_tiles * _SUBLANE * _LANE * 4),
        ),
    )(logits)

    # Tiny final reduce over per-tile partials (outside the kernel).
    return jnp.sum(partials[:, 0, 0])


def supcon_loss_ref(logits: jax.Array) -> jax.Array:
    """Pure-JAX reference mirroring the PyTorch code exactly."""
    logits = logits.astype(jnp.float32)
    b = logits.shape[0]
    mask = jnp.ones((b, b), dtype=jnp.float32)
    exp_logits = jnp.exp(logits)
    log_prob = logits - jnp.log(exp_logits.sum(axis=1, keepdims=True))
    mean_log_prob_pos = (mask * log_prob).sum(axis=1) / mask.sum(axis=1)
    return -mean_log_prob_pos.mean()


if __name__ == "__main__":
    # Small primary example consistent with the module: (B, B) similarity logits.
    B = 8
    logits = jax.random.normal(jax.random.PRNGKey(0), (B, B), dtype=jnp.float32)
    loss = supcon_loss(logits)
    jax.block_until_ready(loss)
    ref = supcon_loss_ref(logits)
    assert jnp.allclose(loss, ref, atol=1e-5, rtol=1e-5), (loss, ref)

    # bf16 ingestion path (kernel casts per-chunk to f32 internally).
    logits_bf16 = jax.random.normal(
        jax.random.PRNGKey(1), (16, 16), dtype=jnp.float32).astype(jnp.bfloat16)
    loss_bf16 = supcon_loss(logits_bf16)
    jax.block_until_ready(loss_bf16)
    ref_bf16 = supcon_loss_ref(logits_bf16)
    assert jnp.allclose(loss_bf16, ref_bf16, atol=1e-4, rtol=1e-4), (
        loss_bf16, ref_bf16)

    # Moderate bf16 case exercising the multi-tile grid, 512-lane column
    # chunking, the MXU row-sum offload and padded-last-tile masking paths.
    Bc = 600
    logits_chunked = jax.random.normal(
        jax.random.PRNGKey(2), (Bc, Bc), dtype=jnp.float32).astype(jnp.bfloat16)
    loss_c = supcon_loss(logits_chunked)
    jax.block_until_ready(loss_c)
    ref_c = supcon_loss_ref(logits_chunked)
    assert jnp.allclose(loss_c, ref_c, atol=1e-4, rtol=1e-4), (loss_c, ref_c)

    print("KERNEL_OK")
</pallas_src>

<mosaic_0001>
module attributes {stable_mosaic.version = 11 : i64} {
  func.func @_supcon_partial_kernel(%arg0: i32, %arg1: memref<8x8xf32, #tpu.memory_space<vmem>>, %arg2: memref<1x8x128xf32, #tpu.memory_space<vmem>>) attributes {dimension_semantics = [#tpu.dimension_semantics<parallel>], iteration_bounds = array<i64: 1>, scalar_prefetch = 0 : i64, scratch_operands = 0 : i64, tpu.core_type = #tpu.core_type<tc>, window_params = [{transform_indices = @transform_0, window_bounds = array<i64: 8, 8>}, {transform_indices = @transform_1, window_bounds = array<i64: 1, 8, 128>}]} {
    %cst = arith.constant 0xFF800000 : f32
    %0 = vector.broadcast %cst : f32 to vector<8x1xf32>
    %cst_0 = arith.constant 0.000000e+00 : f32
    %1 = vector.broadcast %cst_0 : f32 to vector<8x1xf32>
    %c0 = arith.constant 0 : index
    %c0_1 = arith.constant 0 : index
    %2 = vector.load %arg1[%c0, %c0_1] : memref<8x8xf32, #tpu.memory_space<vmem>>, vector<8x8xf32>
    %cst_2 = arith.constant dense<0xFF800000> : vector<8xf32>
    %3 = vector.multi_reduction <maximumf>, %2, %cst_2 [1] : vector<8x8xf32> to vector<8xf32>
    %4 = vector.shape_cast %3 : vector<8xf32> to vector<8x1xf32>
    %5 = arith.maximumf %0, %4 : vector<8x1xf32>
    %cst_3 = arith.constant dense<0.000000e+00> : vector<8xf32>
    %6 = vector.multi_reduction <add>, %2, %cst_3 [1] : vector<8x8xf32> to vector<8xf32>
    %7 = vector.shape_cast %6 : vector<8xf32> to vector<8x1xf32>
    %8 = arith.addf %1, %7 : vector<8x1xf32>
    %cst_4 = arith.constant 0.000000e+00 : f32
    %9 = vector.broadcast %cst_4 : f32 to vector<8x1xf32>
    %c0_5 = arith.constant 0 : index
    %c0_6 = arith.constant 0 : index
    %10 = vector.load %arg1[%c0_5, %c0_6] : memref<8x8xf32, #tpu.memory_space<vmem>>, vector<8x8xf32>
    %11 = vector.broadcast %5 : vector<8x1xf32> to vector<8x8xf32>
    %12 = arith.subf %10, %11 : vector<8x8xf32>
    %13 = math.exp %12 : vector<8x8xf32>
    %cst_7 = arith.constant dense<0.000000e+00> : vector<8xf32>
    %14 = vector.multi_reduction <add>, %13, %cst_7 [1] : vector<8x8xf32> to vector<8xf32>
    %15 = vector.shape_cast %14 : vector<8xf32> to vector<8x1xf32>
    %16 = arith.addf %9, %15 : vector<8x1xf32>
    %17 = math.log %16 : vector<8x1xf32>
    %18 = arith.addf %5, %17 : vector<8x1xf32>
    %19 = vector.shape_cast %18 : vector<8x1xf32> to vector<1x8x1xf32>
    %cst_8 = arith.constant dense<0.000000e+00> : vector<1xf32>
    %20 = vector.multi_reduction <add>, %19, %cst_8 [1, 2] : vector<1x8x1xf32> to vector<1xf32>
    %21 = vector.shape_cast %20 : vector<1xf32> to vector<1x1x1xf32>
    %22 = vector.extract %21[0, 0, 0] : f32 from vector<1x1x1xf32>
    %23 = vector.shape_cast %8 : vector<8x1xf32> to vector<1x8x1xf32>
    %cst_9 = arith.constant dense<0.000000e+00> : vector<1xf32>
    %24 = vector.multi_reduction <add>, %23, %cst_9 [1, 2] : vector<1x8x1xf32> to vector<1xf32>
    %25 = vector.shape_cast %24 : vector<1xf32> to vector<1x1x1xf32>
    %26 = vector.extract %25[0, 0, 0] : f32 from vector<1x1x1xf32>
    %cst_10 = arith.constant 1.250000e-01 : f32
    %27 = arith.mulf %cst_10, %22 : f32
    %cst_11 = arith.constant 1.562500e-02 : f32
    %28 = arith.mulf %cst_11, %26 : f32
    %29 = arith.subf %27, %28 : f32
    %30 = vector.broadcast %29 : f32 to vector<1x8x128xf32>
    %c0_12 = arith.constant 0 : index
    %c0_13 = arith.constant 0 : index
    %c0_14 = arith.constant 0 : index
    %31 = vector.load %arg2[%c0_12, %c0_13, %c0_14] : memref<1x8x128xf32, #tpu.memory_space<vmem>>, vector<1x8x128xf32>
    tpu.vector_store %arg2[%c0_12, %c0_13, %c0_14], %30 {strides = array<i32>} : memref<1x8x128xf32, #tpu.memory_space<vmem>>, vector<1x8x128xf32>,
    return
  }
  func.func @transform_0(%arg0: i32) -> (i32, i32) {
    %c0_i32 = arith.constant 0 : i32
    %c0_i32_0 = arith.constant 0 : i32
    return %arg0, %c0_i32 : i32, i32
  }
  func.func @transform_1(%arg0: i32) -> (i32, i32, i32) {
    %c0_i32 = arith.constant 0 : i32
    %c0_i32_0 = arith.constant 0 : i32
    %c0_i32_1 = arith.constant 0 : i32
    return %arg0, %c0_i32, %c0_i32_0 : i32, i32, i32
  }
}

</mosaic_0001>

<bundles_post_ra>
// kernel: tpu_custom_call.1
= control target key start
LH: loop header
LB: loop body
LE: loop exit
PB: predicated region body
PF: predicated region fallthrough
CT: control target
= control target key end

     0   :  { %6 = vsyncpa [#allocation3], 0  ;;  %s175_s0 = inlined_call_operand.hbm [shape: f32[8,8], index: 0, kind: input, shape index: {}]   ;;  %s176_s1 = inlined_call_operand.hbm [shape: f32[1,8,128], index: 1, kind: output, shape index: {}]  }
   0x1   :  { %7 = vsyncpa [#allocation4], 0  ;;  %s139_s6 = smov [#allocation2]   ;;  %s91_s10 = scalar_lea.hbm %s175_s0, 128 }
   0x2   :  { %s14_s7 = sshll.u32 %s139_s6, 4  ;;  %p92_p0 = scmp.ne.s32.totalorder %s175_s0, %s91_s10  ;;  %s15_s7 = int_to_ptr.vmem [resolvable:$true] %s14_s7 }
   0x3   :  { %p95_p1 = scmp.lt.u32.totalorder %s91_s10, %s175_s0 }
   0x5   :  { %p97_p2 = pnand %p95_p1, %p92_p0 }
   0x7   :  { %100 = shalt.err (!%p97_p2)
}
   0x8   :  { %s101_s15 = scalar_lea.vmem %s15_s7, 128  ;;  %p106_p4 = scmp.lt.s32.totalorder %s15_s7, %s15_s7 }
   0x9   :  { %p102_p3 = scmp.ne.s32.totalorder %s15_s7, %s101_s15  ;;  %p107_p5 = scmp.lt.s32.totalorder %s101_s15, %s101_s15 }
   0xb   :  { %p108_p6 = por %p107_p5, %p106_p4 }
   0xd   :  { %p109_p7 = pnand %p108_p6, %p102_p3 }
   0xf   :  { %112 = shalt.err (!%p109_p7)
}
  0x10   :  { %17 = dma.hbm_to_vmem [thread:$0]  %s175_s0, 128, %s15_s7, [#allocation3]  }
  0x11   :  { %135 = dma.done.wait [#allocation3], 128  }
  0x12   :  { %136 = vsyncadd [#allocation3], 4294967168  ;;  %vm22_vm0 = vcmask 64512   ;;  %v21_v0 = vld [vmem:[#allocation2] sm:$0xff]  ;;  %vm40_vm1 = vcmask 7168   ;;  %s140_s21 = smov [#allocation5]  }
  0x13   :  { %v23_v1 = vsel %vm22_vm0, %v21_v0, -inf  ;;  %v26_v2 = vsel %vm22_vm0, %v21_v0, 0.0  ;;  %s72_s22 = sshll.u32 %s140_s21, 4  ;;  %s73_s22 = int_to_ptr.vmem [resolvable:$true] %s72_s22 }
  0x14   :  { %24 = vmax.xlane.f32.xlu0 %v23_v1  ;;  %27 = vadd.xlane.f32.xlu1 %v26_v2  ;;  %s113_s24 = scalar_lea.vmem %s73_s22, 128  ;;  %p118_p9 = scmp.lt.s32.totalorder %s73_s22, %s73_s22 }
  0x15   :  { %p114_p8 = scmp.ne.s32.totalorder %s73_s22, %s113_s24  ;;  %p119_p10 = scmp.lt.s32.totalorder %s113_s24, %s113_s24 }
  0x17   :  { %p120_p11 = por %p119_p10, %p118_p9 }
  0x19   :  { %p121_p12 = pnand %p120_p11, %p114_p8 }
  0xa1   :  { %v25_v3 = vpop.xlane.xlu0 %24  ;;  %v28_v8 = vpop.xlane.xlu1 %27 }
  0xa2   :  { %v30_v4 = vsub.f32 %v21_v0, %v25_v3  ;;  %v51_v9 = vsel %vm40_vm1, %v28_v8, 0.0 }
  0xa4   :  { %v31_v5 = vmul.f32 1.442695, %v30_v4 }
  0xa6   :  { %87 = vpow2.f32 %v31_v5 }
  0xb0   :  { %v88_v6 = vpop.eup %87 }
  0xb1   :  { %v33_v7 = vsel %vm22_vm0, %v88_v6, 0.0 }
  0xb2   :  { %34 = vadd.xlane.f32.xlu0 %v33_v7 }
  0xb6   :  { %52 = vadd.xlane.f32.xlu0 %v51_v9 }
 0x13f   :  { %v35_v10 = vpop.xlane.xlu0 %34 }
 0x140   :  { %89 = vlog2.f32 %v35_v10 }
 0x143   :  { %v53_v15 = vpop.xlane.xlu0 %52 }
 0x144   :  { %v54_v16 = vrot.slane %v53_v15, 4 }
 0x146   :  { %v55_v17 = vadd.f32 %v54_v16, %v53_v15 }
 0x148   :  { %v56_v18 = vrot.slane %v55_v17, 2 }
 0x14a   :  { %v90_v11 = vpop.eup %89  ;;  %v57_v22 = vadd.f32 %v56_v18, %v55_v17 }
 0x14b   :  { %v38_v12 = vmul.f32 0.6931472, %v90_v11 }
 0x14c   :  { %v58_v25 = vrot.slane %v57_v22, 1 }
 0x14d   :  { %v39_v13 = vadd.f32 %v38_v12, %v25_v3 }
 0x14e   :  { %v59_v28 = vadd.f32 %v58_v25, %v57_v22 }
 0x14f   :  { %v41_v14 = vsel %vm40_vm1, %v39_v13, 0.0 }
 0x150   :  { %42 = vadd.xlane.f32.xlu1 %v41_v14 }
 0x1dd   :  { %v43_v19 = vpop.xlane.xlu1 %42 }
 0x1de   :  { %v44_v20 = vrot.slane %v43_v19, 4 }
 0x1e0   :  { %v45_v21 = vadd.f32 %v44_v20, %v43_v19 }
 0x1e2   :  { %v46_v23 = vrot.slane %v45_v21, 2 }
 0x1e4   :  { %v47_v24 = vadd.f32 %v46_v23, %v45_v21 }
 0x1e6   :  { %v48_v26 = vrot.slane %v47_v24, 1 }
 0x1e8   :  { %v49_v27 = vadd.f32 %v48_v26, %v47_v24 }
 0x1ea   :  { %81 = vpush %v49_v27 }
 0x1eb   :  { %83 = vpush %v59_v28 }
 0x21b   :  { %s82_s0 = spop %81 }
 0x21c   :  { %s61_s18 = smul.f32 0.125, %s82_s0  ;;  %s84_s19 = spop %83 }
 0x21d   :  { %s62_s20 = smul.f32 0.015625, %s84_s19 }
 0x21f   :  { %s63_s23 = ssub.f32 %s61_s18, %s62_s20 }
 0x221   :  { %v64_v29 = vstv %s63_s23 }
 0x222   :  { %65 = vst [vmem:[#allocation5] sm:$0xff] %v64_v29 }
 0x223   :  { %124 = shalt.err (!%p121_p12)
}
 0x224   :  { %s125_s27 = scalar_lea.hbm %s176_s1, 128 }
 0x225   :  { %p126_p13 = scmp.ne.s32.totalorder %s176_s1, %s125_s27  ;;  %p129_p0 = scmp.lt.u32.totalorder %s125_s27, %s176_s1 }
 0x227   :  { %p131_p1 = pnand %p129_p0, %p126_p13 }
 0x229   :  { %134 = shalt.err (!%p131_p1)
}
 0x22a   :  { %75 = dma.vmem_to_hbm [thread:$0]  %s73_s22, 128, %s176_s1, [#allocation4]  }
 0x22b   :  { %137 = dma.done.wait [#allocation4], 128  }
 0x22c   :  { %138 = vsyncadd [#allocation4], 4294967168 }
 0x22d   :  { %79 = vsyncpa [#allocation3], 1 }
 0x22e   :  { %80 = vsyncpa [#allocation4], 1 }

</bundles_post_ra>
